<compile_context>
chip_gen: v7x
topology: tpu7x:2x2x1
jax: 0.10.0
libtpu: 0.0.40
codegen_flags: <defaults>
</compile_context>

<pallas_src>
import jax
import jax.numpy as jnp
import numpy as np
from jax.experimental import pallas as pl
from jax.experimental.pallas import tpu as pltpu

LS = 60        # hidden width of the torch module
HP = 64        # hidden width zero-padded to a multiple of 8 sublanes
LANE = 128     # TPU lane width (batch-tile granularity)
MAX_TB = 8192  # batch-tile cap: ~6 MiB of live activations, fits all chips


def _mlp_tanh_kernel(x_ref, w_in_ref, w_hid_ref, w_out_ref, b_hid_ref,
                     b_out_ref, o_ref):
    """One batch tile, entirely in VMEM.  Activations are feature-major
    (HP, TB): batch on the lane axis (lane-dense), features on sublanes.

    x_ref    : (1, TB)        o_ref : (1, TB)
    w_in_ref : (HP, 1)        first-layer weight column (torch (60,1), padded)
    w_hid_ref: (3, HP, HP)    hidden weights, torch (out,in) layout, padded
    w_out_ref: (HP, 1)        last-layer weight as a column (torch (1,60)^T)
    b_hid_ref: (4, HP, 1)     biases of layers 1-4, zero-padded
    b_out_ref: (1, 1) SMEM    scalar output bias
    """
    x = x_ref[...]                                            # (1, TB)

    # Layer 1 (in_features=1): K=1 matmul is degenerate -> VPU outer product.
    h = jnp.tanh(w_in_ref[...] * x + b_hid_ref[0])            # (HP, TB)

    # Layers 2-4: (HP,HP) @ (HP,TB) on the MXU with f32 accumulation.
    for l in range(3):
        h = jnp.dot(w_hid_ref[l], h, preferred_element_type=jnp.float32)
        h = jnp.tanh(h + b_hid_ref[l + 1])                    # (HP, TB)

    # Layer 5 (out_features=1): N=1 matmul is degenerate -> VPU multiply +
    # sublane reduction; scalar bias added after the reduction (no full-tile
    # broadcast add of a mostly-zero column).
    y = jnp.sum(w_out_ref[...] * h, axis=0, keepdims=True)    # (1, TB)
    o_ref[...] = (y + b_out_ref[0, 0]).astype(o_ref.dtype)


def make_params(key):
    """Deterministic parameters in PyTorch nn.Linear layout:
    w: (out, in), b: (out,), U(-1/sqrt(fan_in), +1/sqrt(fan_in))."""
    dims = [(1, LS), (LS, LS), (LS, LS), (LS, LS), (LS, 1)]
    params = []
    for fan_in, fan_out in dims:
        key, kw, kb = jax.random.split(key, 3)
        bound = 1.0 / np.sqrt(fan_in)
        w = jax.random.uniform(kw, (fan_out, fan_in), jnp.float32, -bound, bound)
        b = jax.random.uniform(kb, (fan_out,), jnp.float32, -bound, bound)
        params.append((w, b))
    return params


def pack_params(params):
    """Torch-layout params -> packed, zero-padded kernel operands."""
    (w1, b1), (w2, b2), (w3, b3), (w4, b4), (w5, b5) = params

    def pad_col(v):                       # (LS,) -> (HP, 1)
        return jnp.zeros((HP, 1), jnp.float32).at[:v.shape[0], 0].set(v)

    w_in = jnp.zeros((HP, 1), jnp.float32).at[:LS, 0].set(w1[:, 0])

    w_hid = jnp.zeros((3, HP, HP), jnp.float32)
    for i, w in enumerate((w2, w3, w4)):
        w_hid = w_hid.at[i, :LS, :LS].set(w)

    w_out = jnp.zeros((HP, 1), jnp.float32).at[:LS, 0].set(w5[0, :])

    b_hid = jnp.stack([pad_col(b1), pad_col(b2), pad_col(b3), pad_col(b4)])
    b_out = jnp.full((1, 1), b5[0], jnp.float32)   # scalar, goes to SMEM

    return w_in, w_hid, w_out, b_hid, b_out


def _choose_tiling(batch):
    """Return (padded batch Bp, batch tile TB).

    TB is a multiple of 128, divides Bp exactly and is capped at MAX_TB.
    Small batches that fit one tile are split into two even tiles when
    possible so the "parallel" grid axis can shard across v7x's 2 TCs."""
    bp = ((batch + LANE - 1) // LANE) * LANE
    if bp <= MAX_TB:
        half = bp // 2
        if half >= LANE and half % LANE == 0:
            return bp, half                        # 2 even tiles (v7x dual-TC)
        return bp, bp                              # single tile
    n_tiles = -(-bp // MAX_TB)                     # ceil-div
    return n_tiles * MAX_TB, MAX_TB                # pad so TB divides Bp


def network_forward(x, packed):
    """x: (B, 1) float32 -> (B, 1) float32 (same semantics as Network.forward)."""
    w_in, w_hid, w_out, b_hid, b_out = packed
    B = x.shape[0]
    Bp, TB = _choose_tiling(B)
    n_tiles = Bp // TB

    # Lane-dense layout: batch on the lane axis, zero-padded to Bp.
    xt = jnp.zeros((1, Bp), jnp.float32).at[0, :B].set(x[:, 0])

    # Padded work actually executed per row (HP-wide layers).
    flops_per_row = 2 * (HP + 3 * HP * HP + HP)
    cost = pl.CostEstimate(
        flops=Bp * flops_per_row,
        transcendentals=Bp * 4 * HP,
        bytes_accessed=4 * (2 * Bp + HP + 3 * HP * HP + HP + 4 * HP + 1))

    out = pl.pallas_call(
        _mlp_tanh_kernel,
        out_shape=jax.ShapeDtypeStruct((1, Bp), jnp.float32),
        grid=(n_tiles,),
        in_specs=[
            pl.BlockSpec((1, TB), lambda i: (0, i)),           # x batch tile
            pl.BlockSpec((HP, 1), lambda i: (0, 0)),           # w_in   (resident)
            pl.BlockSpec((3, HP, HP), lambda i: (0, 0, 0)),    # w_hid  (resident)
            pl.BlockSpec((HP, 1), lambda i: (0, 0)),           # w_out  (resident)
            pl.BlockSpec((4, HP, 1), lambda i: (0, 0, 0)),     # hidden biases
            pl.BlockSpec(memory_space=pltpu.MemorySpace.SMEM), # scalar out bias
        ],
        out_specs=pl.BlockSpec((1, TB), lambda i: (0, i)),
        compiler_params=pltpu.CompilerParams(
            dimension_semantics=("parallel",),
            vmem_limit_bytes=32 * 1024 * 1024),
        cost_estimate=cost,
    )(xt, w_in, w_hid, w_out, b_hid, b_out)

    return out[0, :B].reshape(B, 1)


def network_forward_ref(x, params):
    """Pure-JAX reference (torch-layout weights: y = x @ W^T + b)."""
    h = x
    for i, (w, b) in enumerate(params):
        h = h @ w.T + b
        if i < len(params) - 1:
            h = jnp.tanh(h)
    return h


if __name__ == "__main__":
    key = jax.random.PRNGKey(0)
    kp, kx1, kx2 = jax.random.split(key, 3)

    params = make_params(kp)
    packed = pack_params(params)

    # Small single-tile case (matches the module's (B, 1) input).
    x_small = jax.random.uniform(kx1, (8, 1), jnp.float32, -2.0, 2.0)
    out_small = jax.block_until_ready(network_forward(x_small, packed))
    ref_small = network_forward_ref(x_small, params)
    np.testing.assert_allclose(np.asarray(out_small), np.asarray(ref_small),
                               rtol=1e-5, atol=1e-5)

    # Multi-tile case: exercises the 2-tile (v7x dual-TC) path and the
    # batch-padding / slice-off logic.
    x_big = jax.random.uniform(kx2, (500, 1), jnp.float32, -2.0, 2.0)
    out_big = jax.block_until_ready(network_forward(x_big, packed))
    ref_big = network_forward_ref(x_big, params)
    np.testing.assert_allclose(np.asarray(out_big), np.asarray(ref_big),
                               rtol=1e-5, atol=1e-5)

    print("KERNEL_OK")
</pallas_src>

<mosaic_0001>
module attributes {stable_mosaic.version = 11 : i64} {
  func.func @_mlp_tanh_kernel(%arg0: i32, %arg1: memref<1x128xf32, #tpu.memory_space<vmem>>, %arg2: memref<64x1xf32, #tpu.memory_space<vmem>>, %arg3: memref<3x64x64xf32, #tpu.memory_space<vmem>>, %arg4: memref<64x1xf32, #tpu.memory_space<vmem>>, %arg5: memref<4x64x1xf32, #tpu.memory_space<vmem>>, %arg6: memref<1x1xf32, #tpu.memory_space<smem>>, %arg7: memref<1x128xf32, #tpu.memory_space<vmem>>) attributes {dimension_semantics = [#tpu.dimension_semantics<parallel>], iteration_bounds = array<i64: 1>, scalar_prefetch = 0 : i64, scratch_operands = 0 : i64, tpu.core_type = #tpu.core_type<tc>, window_params = [{transform_indices = @transform_0, window_bounds = array<i64: 1, 128>}, {pipeline_mode = #tpu.pipeline_mode<synchronous>, transform_indices = @transform_1, window_bounds = array<i64: 64, 1>}, {pipeline_mode = #tpu.pipeline_mode<synchronous>, transform_indices = @transform_2, window_bounds = array<i64: 3, 64, 64>}, {pipeline_mode = #tpu.pipeline_mode<synchronous>, transform_indices = @transform_3, window_bounds = array<i64: 64, 1>}, {pipeline_mode = #tpu.pipeline_mode<synchronous>, transform_indices = @transform_4, window_bounds = array<i64: 4, 64, 1>}, {transform_indices = @transform_5, window_bounds = array<i64: 1, 1>}, {transform_indices = @transform_6, window_bounds = array<i64: 1, 128>}]} {
    %c0 = arith.constant 0 : index
    %c0_0 = arith.constant 0 : index
    %0 = vector.load %arg1[%c0, %c0_0] : memref<1x128xf32, #tpu.memory_space<vmem>>, vector<1x128xf32>
    %c0_1 = arith.constant 0 : index
    %c0_2 = arith.constant 0 : index
    %1 = vector.load %arg2[%c0_1, %c0_2] : memref<64x1xf32, #tpu.memory_space<vmem>>, vector<64x1xf32>
    %2 = vector.broadcast %1 : vector<64x1xf32> to vector<64x128xf32>
    %3 = vector.broadcast %0 : vector<1x128xf32> to vector<64x128xf32>
    %4 = arith.mulf %2, %3 : vector<64x128xf32>
    %c0_3 = arith.constant 0 : index
    %c0_4 = arith.constant 0 : index
    %c0_5 = arith.constant 0 : index
    %5 = vector.load %arg5[%c0_3, %c0_4, %c0_5] : memref<4x64x1xf32, #tpu.memory_space<vmem>>, vector<1x64x1xf32>
    %6 = vector.shape_cast %5 : vector<1x64x1xf32> to vector<64x1xf32>
    %7 = vector.broadcast %6 : vector<64x1xf32> to vector<64x128xf32>
    %8 = arith.addf %4, %7 : vector<64x128xf32>
    %9 = math.tanh %8 : vector<64x128xf32>
    %c0_6 = arith.constant 0 : index
    %c0_7 = arith.constant 0 : index
    %c0_8 = arith.constant 0 : index
    %10 = vector.load %arg3[%c0_6, %c0_7, %c0_8] : memref<3x64x64xf32, #tpu.memory_space<vmem>>, vector<1x64x64xf32>
    %11 = vector.shape_cast %10 : vector<1x64x64xf32> to vector<64x64xf32>
    %cst = arith.constant dense<0.000000e+00> : vector<64x128xf32>
    %12 = tpu.matmul %11, %9, %cst {dimension_numbers = #tpu.dot_dimension_numbers<[1], [0], [0], [1], [0, 0, 1, 1], [], []>} : vector<64x64xf32>, vector<64x128xf32>, vector<64x128xf32> -> vector<64x128xf32>
    %c1 = arith.constant 1 : index
    %c0_9 = arith.constant 0 : index
    %c0_10 = arith.constant 0 : index
    %13 = vector.load %arg5[%c1, %c0_9, %c0_10] : memref<4x64x1xf32, #tpu.memory_space<vmem>>, vector<1x64x1xf32>
    %14 = vector.shape_cast %13 : vector<1x64x1xf32> to vector<64x1xf32>
    %15 = vector.broadcast %14 : vector<64x1xf32> to vector<64x128xf32>
    %16 = arith.addf %12, %15 : vector<64x128xf32>
    %17 = math.tanh %16 : vector<64x128xf32>
    %c1_11 = arith.constant 1 : index
    %c0_12 = arith.constant 0 : index
    %c0_13 = arith.constant 0 : index
    %18 = vector.load %arg3[%c1_11, %c0_12, %c0_13] : memref<3x64x64xf32, #tpu.memory_space<vmem>>, vector<1x64x64xf32>
    %19 = vector.shape_cast %18 : vector<1x64x64xf32> to vector<64x64xf32>
    %cst_14 = arith.constant dense<0.000000e+00> : vector<64x128xf32>
    %20 = tpu.matmul %19, %17, %cst_14 {dimension_numbers = #tpu.dot_dimension_numbers<[1], [0], [0], [1], [0, 0, 1, 1], [], []>} : vector<64x64xf32>, vector<64x128xf32>, vector<64x128xf32> -> vector<64x128xf32>
    %c2 = arith.constant 2 : index
    %c0_15 = arith.constant 0 : index
    %c0_16 = arith.constant 0 : index
    %21 = vector.load %arg5[%c2, %c0_15, %c0_16] : memref<4x64x1xf32, #tpu.memory_space<vmem>>, vector<1x64x1xf32>
    %22 = vector.shape_cast %21 : vector<1x64x1xf32> to vector<64x1xf32>
    %23 = vector.broadcast %22 : vector<64x1xf32> to vector<64x128xf32>
    %24 = arith.addf %20, %23 : vector<64x128xf32>
    %25 = math.tanh %24 : vector<64x128xf32>
    %c2_17 = arith.constant 2 : index
    %c0_18 = arith.constant 0 : index
    %c0_19 = arith.constant 0 : index
    %26 = vector.load %arg3[%c2_17, %c0_18, %c0_19] : memref<3x64x64xf32, #tpu.memory_space<vmem>>, vector<1x64x64xf32>
    %27 = vector.shape_cast %26 : vector<1x64x64xf32> to vector<64x64xf32>
    %cst_20 = arith.constant dense<0.000000e+00> : vector<64x128xf32>
    %28 = tpu.matmul %27, %25, %cst_20 {dimension_numbers = #tpu.dot_dimension_numbers<[1], [0], [0], [1], [0, 0, 1, 1], [], []>} : vector<64x64xf32>, vector<64x128xf32>, vector<64x128xf32> -> vector<64x128xf32>
    %c3 = arith.constant 3 : index
    %c0_21 = arith.constant 0 : index
    %c0_22 = arith.constant 0 : index
    %29 = vector.load %arg5[%c3, %c0_21, %c0_22] : memref<4x64x1xf32, #tpu.memory_space<vmem>>, vector<1x64x1xf32>
    %30 = vector.shape_cast %29 : vector<1x64x1xf32> to vector<64x1xf32>
    %31 = vector.broadcast %30 : vector<64x1xf32> to vector<64x128xf32>
    %32 = arith.addf %28, %31 : vector<64x128xf32>
    %33 = math.tanh %32 : vector<64x128xf32>
    %c0_23 = arith.constant 0 : index
    %c0_24 = arith.constant 0 : index
    %34 = vector.load %arg4[%c0_23, %c0_24] : memref<64x1xf32, #tpu.memory_space<vmem>>, vector<64x1xf32>
    %35 = vector.broadcast %34 : vector<64x1xf32> to vector<64x128xf32>
    %36 = arith.mulf %35, %33 : vector<64x128xf32>
    %cst_25 = arith.constant dense<0.000000e+00> : vector<128xf32>
    %37 = vector.multi_reduction <add>, %36, %cst_25 [0] : vector<64x128xf32> to vector<128xf32>
    %38 = vector.shape_cast %37 : vector<128xf32> to vector<1x128xf32>
    %c0_26 = arith.constant 0 : index
    %c0_27 = arith.constant 0 : index
    %39 = memref.load %arg6[%c0_26, %c0_27] : memref<1x1xf32, #tpu.memory_space<smem>>
    %40 = vector.broadcast %39 : f32 to vector<1x128xf32>
    %41 = arith.addf %38, %40 : vector<1x128xf32>
    %c0_28 = arith.constant 0 : index
    %c0_29 = arith.constant 0 : index
    %42 = vector.load %arg7[%c0_28, %c0_29] : memref<1x128xf32, #tpu.memory_space<vmem>>, vector<1x128xf32>
    tpu.vector_store %arg7[%c0_28, %c0_29], %41 {strides = array<i32>} : memref<1x128xf32, #tpu.memory_space<vmem>>, vector<1x128xf32>,
    return
  }
  func.func @transform_0(%arg0: i32) -> (i32, i32) {
    %c0_i32 = arith.constant 0 : i32
    %c0_i32_0 = arith.constant 0 : i32
    return %c0_i32, %arg0 : i32, i32
  }
  func.func @transform_1(%arg0: i32) -> (i32, i32) {
    %c0_i32 = arith.constant 0 : i32
    %c0_i32_0 = arith.constant 0 : i32
    %c0_i32_1 = arith.constant 0 : i32
    return %c0_i32, %c0_i32_0 : i32, i32
  }
  func.func @transform_2(%arg0: i32) -> (i32, i32, i32) {
    %c0_i32 = arith.constant 0 : i32
    %c0_i32_0 = arith.constant 0 : i32
    %c0_i32_1 = arith.constant 0 : i32
    %c0_i32_2 = arith.constant 0 : i32
    return %c0_i32, %c0_i32_0, %c0_i32_1 : i32, i32, i32
  }
  func.func @transform_3(%arg0: i32) -> (i32, i32) {
    %c0_i32 = arith.constant 0 : i32
    %c0_i32_0 = arith.constant 0 : i32
    %c0_i32_1 = arith.constant 0 : i32
    return %c0_i32, %c0_i32_0 : i32, i32
  }
  func.func @transform_4(%arg0: i32) -> (i32, i32, i32) {
    %c0_i32 = arith.constant 0 : i32
    %c0_i32_0 = arith.constant 0 : i32
    %c0_i32_1 = arith.constant 0 : i32
    %c0_i32_2 = arith.constant 0 : i32
    return %c0_i32, %c0_i32_0, %c0_i32_1 : i32, i32, i32
  }
  func.func @transform_5(%arg0: i32) -> (i32, i32) {
    %c0_i32 = arith.constant 0 : i32
    %c0_i32_0 = arith.constant 0 : i32
    %c0_i32_1 = arith.constant 0 : i32
    return %c0_i32, %c0_i32_0 : i32, i32
  }
  func.func @transform_6(%arg0: i32) -> (i32, i32) {
    %c0_i32 = arith.constant 0 : i32
    %c0_i32_0 = arith.constant 0 : i32
    return %c0_i32, %arg0 : i32, i32
  }
}

</mosaic_0001>

<bundles_post_ra>
// kernel: tpu_custom_call.1
= control target key start
LH: loop header
LB: loop body
LE: loop exit
PB: predicated region body
PF: predicated region fallthrough
CT: control target
= control target key end

     0   :  { %v1169_v2 = vmov 0   ;;  %s1464_s0 = inlined_call_operand.vmem [shape: f32[1,128], index: 0, kind: input, shape index: {}]   ;;  %s1465_s1 = inlined_call_operand.vmem [shape: f32[64,1], index: 1, kind: input, shape index: {}]   ;;  %s1466_s2 = inlined_call_operand.vmem [shape: f32[3,64,64], index: 2, kind: input, shape index: {}]   ;;  %s1467_s3 = inlined_call_operand.vmem [shape: f32[64,1], index: 3, kind: input, shape index: {}]   ;;  %s1468_s4 = inlined_call_operand.vmem [shape: f32[4,64,1], index: 4, kind: input, shape index: {}]   ;;  %s1469_s5 = inlined_call_operand.<no memory space> [shape: f32[1,1], index: 5, kind: input, shape index: {}]   ;;  %s1470_s6 = inlined_call_operand.hbm [shape: f32[1,128], index: 6, kind: output, shape index: {}]  }
   0x1   :  { %v88_v0 = vld [vmem:[%s1468_s4] sm:$0xff]  ;;  %1080 = vset.pattern.permute.xlu1 %v1169_v2  ;;  %1079 = vset.pattern.permute.xlu0 %v1169_v2  ;;  %v89_v3 = vld [vmem:[%s1468_s4 + $0x8] sm:$0xff]  ;;  %v29_v5 = vld [vmem:[%s1465_s1 + $0x18] sm:$0xff] }
   0x2   :  { %v26_v1 = vld [vmem:[%s1465_s1] sm:$0xff]  ;;  %98 = vperm.xlu1 %1080, %v88_v0   ;;  %v27_v4 = vld [vmem:[%s1465_s1 + $0x8] sm:$0xff]  ;;  %v28_v6 = vld [vmem:[%s1465_s1 + $0x10] sm:$0xff] }
   0x3   :  { %36 = vperm.xlu0 %1079, %v26_v1   ;;  %v91_v7 = vld [vmem:[%s1468_s4 + $0x18] sm:$0xff]  ;;  %v90_v8 = vld [vmem:[%s1468_s4 + $0x10] sm:$0xff]  ;;  %v31_v9 = vld [vmem:[%s1465_s1 + $0x28] sm:$0xff] }
   0x4   :  { %v30_v10 = vld [vmem:[%s1465_s1 + $0x20] sm:$0xff] }
   0x6   :  { %103 = vperm.xlu1 %1080, %v89_v3  }
   0x7   :  { %41 = vperm.xlu0 %1079, %v27_v4  }
   0xa   :  { %51 = vperm.xlu1 %1080, %v29_v5  }
   0xb   :  { %46 = vperm.xlu0 %1079, %v28_v6  }
   0xe   :  { %113 = vperm.xlu1 %1080, %v91_v7  }
   0xf   :  { %108 = vperm.xlu0 %1079, %v90_v8  }
  0x10   :  { %12 = vsyncpa [#allocation4], 0  ;;  %v93_v11 = vld [vmem:[%s1468_s4 + $0x28] sm:$0xff]  ;;  %v92_v12 = vld [vmem:[%s1468_s4 + $0x20] sm:$0xff]  ;;  %vm209_vm0 = vcmask 523264   ;;  %s1170_s12 = smov [#allocation3]  }
  0x11   :  { %v33_v13 = vld [vmem:[%s1465_s1 + $0x38] sm:$0xff]  ;;  %v32_v14 = vld [vmem:[%s1465_s1 + $0x30] sm:$0xff]  ;;  %v826_v17 = vld [vmem:[%s1468_s4 + $0x48] sm:$0xff]  ;;  %s816_s13 = sshll.u32 %s1170_s12, 4  ;;  %s817_s13 = int_to_ptr.vmem [resolvable:$true] %s816_s13 }
  0x12   :  { %61 = vperm.xlu1 %1080, %v31_v9   ;;  %v95_v15 = vld [vmem:[%s1468_s4 + $0x38] sm:$0xff]  ;;  %v94_v16 = vld [vmem:[%s1468_s4 + $0x30] sm:$0xff]  ;;  %v825_v18 = vld [vmem:[%s1468_s4 + $0x40] sm:$0xff]  ;;  %s1145_s14 = scalar_lea.vmem %s817_s13, 16  ;;  %s1149_s15 = scalar_lea.vmem %s817_s13, 32 }
  0x13   :  { %56 = vperm.xlu0 %1079, %v30_v10   ;;  %v828_v19 = vld [vmem:[%s1468_s4 + $0x58] sm:$0xff]  ;;  %v827_v20 = vld [vmem:[%s1468_s4 + $0x50] sm:$0xff]  ;;  %v830_v21 = vld [vmem:[%s1468_s4 + $0x68] sm:$0xff]  ;;  %p1146_p0 = scmp.ne.s32.totalorder %s817_s13, %s1145_s14  ;;  %p1150_p1 = scmp.lt.s32.totalorder %s817_s13, %s817_s13 }
  0x14   :  { %v829_v22 = vld [vmem:[%s1468_s4 + $0x60] sm:$0xff]  ;;  %v832_v23 = vld [vmem:[%s1468_s4 + $0x78] sm:$0xff]  ;;  %v831_v24 = vld [vmem:[%s1468_s4 + $0x70] sm:$0xff]  ;;  %p1151_p2 = scmp.lt.s32.totalorder %s1149_s15, %s1145_s14 }
  0x15   :  { %v850_v25 = vld [vmem:[%s1468_s4 + $0x88] sm:$0xff]  ;;  %v849_v26 = vld [vmem:[%s1468_s4 + $0x80] sm:$0xff]  ;;  %v852_v28 = vld [vmem:[%s1468_s4 + $0x98] sm:$0xff] }
  0x16   :  { %123 = vperm.xlu1 %1080, %v93_v11   ;;  %v152_v27 = vld [vmem:[%s1466_s2] sm:$0xff]  ;;  %v851_v29 = vld [vmem:[%s1468_s4 + $0x90] sm:$0xff]  ;;  %v854_v30 = vld [vmem:[%s1468_s4 + $0xa8] sm:$0xff]  ;;  %p1152_p3 = por %p1151_p2, %p1150_p1 }
  0x17   :  { %118 = vperm.xlu0 %1079, %v92_v12   ;;  %953 = vmatprep.mubr.msk.f32.mxu0 %vm209_vm0, %v152_v27  ;;  %v853_v31 = vld [vmem:[%s1468_s4 + $0xa0] sm:$0xff]  ;;  %v856_v32 = vld [vmem:[%s1468_s4 + $0xb8] sm:$0xff]  ;;  %v855_v33 = vld [vmem:[%s1468_s4 + $0xb0] sm:$0xff] }
  0x18   :  { %v874_v34 = vld [vmem:[%s1468_s4 + $0xc8] sm:$0xff]  ;;  %v873_v35 = vld [vmem:[%s1468_s4 + $0xc0] sm:$0xff]  ;;  %v876_v36 = vld [vmem:[%s1468_s4 + $0xd8] sm:$0xff]  ;;  %p1153_p4 = pnand %p1152_p3, %p1146_p0 }
  0x19   :  { %v875_v37 = vld [vmem:[%s1468_s4 + $0xd0] sm:$0xff]  ;;  %v878_v38 = vld [vmem:[%s1468_s4 + $0xe8] sm:$0xff]  ;;  %v877_v39 = vld [vmem:[%s1468_s4 + $0xe0] sm:$0xff] }
  0x1a   :  { %71 = vperm.xlu1 %1080, %v33_v13   ;;  %v880_v40 = vld [vmem:[%s1468_s4 + $0xf8] sm:$0xff]  ;;  %v879_v41 = vld [vmem:[%s1468_s4 + $0xf0] sm:$0xff]  ;;  %v738_v42 = vld [vmem:[%s1467_s3 + $0x8] sm:$0xff] }
  0x1b   :  { %66 = vperm.xlu0 %1079, %v32_v14   ;;  %v737_v43 = vld [vmem:[%s1467_s3] sm:$0xff]  ;;  %v740_v44 = vld [vmem:[%s1467_s3 + $0x18] sm:$0xff]  ;;  %v739_v45 = vld [vmem:[%s1467_s3 + $0x10] sm:$0xff] }
  0x1c   :  { %v742_v46 = vld [vmem:[%s1467_s3 + $0x28] sm:$0xff]  ;;  %v741_v47 = vld [vmem:[%s1467_s3 + $0x20] sm:$0xff]  ;;  %v744_v48 = vld [vmem:[%s1467_s3 + $0x38] sm:$0xff] }
  0x1d   :  { %v743_v49 = vld [vmem:[%s1467_s3 + $0x30] sm:$0xff]  ;;  %v824_v50 = vld [vmem:[%s1464_s0] ss:$0 sm:$0xff] }
  0x1e   :  { %133 = vperm.xlu1 %1080, %v95_v15  }
  0x1f   :  { %128 = vperm.xlu0 %1079, %v94_v16  }
  0x22   :  { %176 = vperm.xlu1 %1080, %v826_v17  }
  0x23   :  { %171 = vperm.xlu0 %1079, %v825_v18  }
  0x26   :  { %186 = vperm.xlu1 %1080, %v828_v19  }
  0x27   :  { %181 = vperm.xlu0 %1079, %v827_v20  }
  0x2a   :  { %196 = vperm.xlu1 %1080, %v830_v21  }
  0x2b   :  { %191 = vperm.xlu0 %1079, %v829_v22  }
  0x2e   :  { %206 = vperm.xlu1 %1080, %v832_v23  }
  0x2f   :  { %201 = vperm.xlu0 %1079, %v831_v24  }
  0x32   :  { %372 = vperm.xlu1 %1080, %v850_v25  }
  0x33   :  { %367 = vperm.xlu0 %1079, %v849_v26  }
  0x36   :  { %382 = vperm.xlu1 %1080, %v852_v28  }
  0x37   :  { %377 = vperm.xlu0 %1079, %v851_v29  }
  0x3a   :  { %392 = vperm.xlu1 %1080, %v854_v30  }
  0x3b   :  { %387 = vperm.xlu0 %1079, %v853_v31   ;;  %v153_v31 = vld [vmem:[%s1466_s2 + $0x8] sm:$0xff] }
  0x3e   :  { %402 = vperm.xlu1 %1080, %v856_v32   ;;  %v154_v32 = vld [vmem:[%s1466_s2 + $0x10] sm:$0xff] }
  0x3f   :  { %397 = vperm.xlu0 %1079, %v855_v33   ;;  %v155_v33 = vld [vmem:[%s1466_s2 + $0x18] sm:$0xff] }
  0x42   :  { %567 = vperm.xlu1 %1080, %v874_v34   ;;  %v156_v34 = vld [vmem:[%s1466_s2 + $0x20] sm:$0xff] }
  0x43   :  { %562 = vperm.xlu0 %1079, %v873_v35   ;;  %v157_v35 = vld [vmem:[%s1466_s2 + $0x28] sm:$0xff] }
  0x46   :  { %577 = vperm.xlu1 %1080, %v876_v36   ;;  %v158_v36 = vld [vmem:[%s1466_s2 + $0x30] sm:$0xff] }
  0x47   :  { %572 = vperm.xlu0 %1079, %v875_v37   ;;  %v159_v37 = vld [vmem:[%s1466_s2 + $0x38] sm:$0xff] }
  0x4a   :  { %587 = vperm.xlu1 %1080, %v878_v38   ;;  %v841_v38 = vld [vmem:[%s1466_s2 + $0x40] sm:$0xff] }
  0x4b   :  { %582 = vperm.xlu0 %1079, %v877_v39   ;;  %981 = vmatprep.mubr.msk.f32.mxu1 %vm209_vm0, %v841_v38 }
  0x4e   :  { %597 = vperm.xlu1 %1080, %v880_v40  }
  0x4f   :  { %592 = vperm.xlu0 %1079, %v879_v41  }
  0x52   :  { %752 = vperm.xlu1 %1080, %v738_v42  }
  0x53   :  { %747 = vperm.xlu0 %1079, %v737_v43  }
  0x56   :  { %762 = vperm.xlu1 %1080, %v740_v44  }
  0x57   :  { %757 = vperm.xlu0 %1079, %v739_v45  }
  0x5a   :  { %772 = vperm.xlu1 %1080, %v742_v46  }
  0x5b   :  { %767 = vperm.xlu0 %1079, %v741_v47  }
  0x5e   :  { %782 = vperm.xlu1 %1080, %v744_v48  }
  0x5f   :  { %777 = vperm.xlu0 %1079, %v743_v49  }
  0x81   :  { %v99_v51 = vpop.permute.xlu1 %98 }
  0x82   :  { %v37_v52 = vpop.permute.xlu0 %36 }
  0x83   :  { %v80_v53 = vmul.f32 %v824_v50, %v37_v52 }
  0x85   :  { %v136_v54 = vadd.f32 %v99_v51, %v80_v53  ;;  %v104_v55 = vpop.permute.xlu1 %103 }
  0x86   :  { %v42_v56 = vpop.permute.xlu0 %41 }
  0x87   :  { %v81_v57 = vmul.f32 %v824_v50, %v42_v56  ;;  %1081 = vtanh.f32 %v136_v54 }
  0x89   :  { %v137_v58 = vadd.f32 %v104_v55, %v81_v57  ;;  %v52_v59 = vpop.permute.xlu1 %51 }
  0x8a   :  { %v47_v60 = vpop.permute.xlu0 %46  ;;  %v83_v61 = vmul.f32 %v824_v50, %v52_v59 }
  0x8b   :  { %1083 = vtanh.f32 %v137_v58  ;;  %v82_v62 = vmul.f32 %v824_v50, %v47_v60 }
  0x8d   :  { %v114_v63 = vpop.permute.xlu1 %113 }
  0x8e   :  { %v109_v0 = vpop.permute.xlu0 %108  ;;  %v139_v1 = vadd.f32 %v114_v63, %v83_v61 }
  0x8f   :  { %v138_v2 = vadd.f32 %v109_v0, %v82_v62 }
  0x90   :  { %1085 = vtanh.f32 %v139_v1 }
  0x91   :  { %1087 = vtanh.f32 %v138_v2  ;;  %v62_v3 = vpop.permute.xlu1 %61  ;;  %v1082_v5 = vpop.eup %1081 }
  0x92   :  { %v57_v4 = vpop.permute.xlu0 %56  ;;  %v85_v7 = vmul.f32 %v824_v50, %v62_v3 }
  0x93   :  { %v84_v8 = vmul.f32 %v824_v50, %v57_v4 }
  0x95   :  { %v1084_v6 = vpop.eup %1083  ;;  %v124_v9 = vpop.permute.xlu1 %123 }
  0x96   :  { %v119_v10 = vpop.permute.xlu0 %118  ;;  %v1021_v11 = vpack.c.bf16 %v1084_v6, %v1082_v5  ;;  %v141_v12 = vadd.f32 %v124_v9, %v85_v7 }
  0x97   :  { %v140_v13 = vadd.f32 %v119_v10, %v84_v8 }
  0x98   :  { %1022 = vmatprep.subr.bf16.mxu0 %v1021_v11  ;;  %1089 = vtanh.f32 %v141_v12  ;;  %v843_v12 = vld [vmem:[%s1466_s2 + $0x50] sm:$0xff] }
  0x99   :  { %1024 = vmatpush3.bf16.msra.mxu0 %v1021_v11  ;;  %1091 = vtanh.f32 %v140_v13  ;;  %v72_v14 = vpop.permute.xlu1 %71  ;;  %v842_v11 = vld [vmem:[%s1466_s2 + $0x48] sm:$0xff]  ;;  %v844_v13 = vld [vmem:[%s1466_s2 + $0x58] sm:$0xff] }
  0x9a   :  { %v67_v15 = vpop.permute.xlu0 %66  ;;  %v1086_v16 = vpop.eup %1085  ;;  %v87_v18 = vmul.f32 %v824_v50, %v72_v14  ;;  %v845_v14 = vld [vmem:[%s1466_s2 + $0x60] sm:$0xff] }
  0x9b   :  { %v1088_v17 = vpop.eup %1087  ;;  %v86_v19 = vmul.f32 %v824_v50, %v67_v15  ;;  %v846_v15 = vld [vmem:[%s1466_s2 + $0x68] sm:$0xff] }
  0x9c   :  { %v1025_v20 = vpack.c.bf16 %v1086_v16, %v1088_v17  ;;  %v847_v16 = vld [vmem:[%s1466_s2 + $0x70] sm:$0xff]  ;;  %v848_v17 = vld [vmem:[%s1466_s2 + $0x78] sm:$0xff] }
  0x9d   :  { %v134_v21 = vpop.permute.xlu1 %133 }
  0x9e   :  { %v129_v22 = vpop.permute.xlu0 %128  ;;  %v143_v23 = vadd.f32 %v134_v21, %v87_v18  ;;  %1026 = vmatprep.subr.bf16.mxu0 %v1025_v20  ;;  %v865_v18 = vld [vmem:[%s1466_s2 + $0x80] sm:$0xff] }
  0x9f   :  { %v142_v24 = vadd.f32 %v129_v22, %v86_v19  ;;  %1028 = vmatpush3.bf16.msra.mxu0 %v1025_v20  ;;  %v869_v19 = vld [vmem:[%s1466_s2 + $0xa0] sm:$0xff] }
  0xa0   :  { %1093 = vtanh.f32 %v143_v23 }
  0xa1   :  { %1095 = vtanh.f32 %v142_v24  ;;  %v177_v39 = vpop.permute.xlu1 %176 }
  0xa2   :  { %v1090_v25 = vpop.eup %1089  ;;  %v172_v40 = vpop.permute.xlu0 %171 }
  0xa3   :  { %v1092_v26 = vpop.eup %1091 }
  0xa4   :  { %v1029_v27 = vpack.c.bf16 %v1090_v25, %v1092_v26 }
  0xa5   :  { %v187_v41 = vpop.permute.xlu1 %186 }
  0xa6   :  { %1030 = vmatprep.subr.bf16.mxu0 %v1029_v27  ;;  %v182_v43 = vpop.permute.xlu0 %181 }
  0xa7   :  { %1032 = vmatpush3.bf16.msra.mxu0 %v1029_v27 }
  0xa9   :  { %v197_v50 = vpop.permute.xlu1 %196 }
  0xaa   :  { %v1094_v28 = vpop.eup %1093  ;;  %v192_v52 = vpop.permute.xlu0 %191 }
  0xab   :  { %v1096_v29 = vpop.eup %1095 }
  0xac   :  { %v1033_v30 = vpack.c.bf16 %v1094_v28, %v1096_v29 }
  0xad   :  { %v207_v57 = vpop.permute.xlu1 %206 }
  0xae   :  { %1034 = vmatprep.subr.bf16.mxu0 %v1033_v30  ;;  %v202_v60 = vpop.permute.xlu0 %201 }
  0xaf   :  { %1036 = vmatpush3.bf16.msra.mxu0 %v1033_v30 }
  0xb1   :  { %v373_v20 = vpop.permute.xlu1 %372 }
  0xb2   :  { %954 = vmatmul.mubr.msk.f32.vlgmr.msra.gmra.mrb[0].mxu0 %vm209_vm0, %v153_v31  ;;  %v368_v21 = vpop.permute.xlu0 %367 }
  0xb3   :  { %956 = vmatprep.mubr.msk.f32.mxu0 %vm209_vm0, %v154_v32 }
  0xb5   :  { %v383_v22 = vpop.permute.xlu1 %382 }
  0xb6   :  { %957 = vmatmul.mubr.msk.f32.gmra.mrb[2].mxu0 %vm209_vm0, %v155_v33  ;;  %v378_v24 = vpop.permute.xlu0 %377 }
  0xb7   :  { %959 = vmatprep.mubr.msk.f32.mxu0 %vm209_vm0, %v156_v34 }
  0xb9   :  { %v393_v31 = vpop.permute.xlu1 %392 }
  0xba   :  { %960 = vmatmul.mubr.msk.f32.gmra.mrb[4].mxu0 %vm209_vm0, %v157_v35  ;;  %v388_v33 = vpop.permute.xlu0 %387 }
  0xbb   :  { %962 = vmatprep.mubr.msk.f32.mxu0 %vm209_vm0, %v158_v36 }
  0xbd   :  { %v403_v38 = vpop.permute.xlu1 %402 }
  0xbe   :  { %963 = vmatmul.mubr.msk.f32.gmra.mrb[6].mxu0 %vm209_vm0, %v159_v37 }
  0xbf   :  { %1009 = vmatprep.mubr.msk.f32.mxu0 %vm209_vm0, %v865_v18 }
 0x185   :  { %v955_v42 = vpop.f32.mrb[0].mxu0 }
 0x186   :  { %v306_v44 = vadd.f32 %v955_v42, %v177_v39  ;;  %v300_v45 = vpop.f32.mrb[1].mxu0 }
 0x187   :  { %v301_v46 = vadd.f32 %v300_v45, %v172_v40 }
 0x188   :  { %1097 = vtanh.f32 %v306_v44 }
 0x189   :  { %1099 = vtanh.f32 %v301_v46  ;;  %v958_v47 = vpop.f32.mrb[2].mxu0 }
 0x18a   :  { %v316_v48 = vadd.f32 %v958_v47, %v187_v41  ;;  %v310_v49 = vpop.f32.mrb[3].mxu0  ;;  %v398_v41 = vpop.permute.xlu0 %397 }
 0x18b   :  { %v311_v51 = vadd.f32 %v310_v49, %v182_v43 }
 0x18c   :  { %1101 = vtanh.f32 %v316_v48 }
 0x18d   :  { %1103 = vtanh.f32 %v311_v51  ;;  %v961_v53 = vpop.f32.mrb[4].mxu0 }
 0x18e   :  { %v326_v54 = vadd.f32 %v961_v53, %v197_v50  ;;  %v320_v55 = vpop.f32.mrb[5].mxu0 }
 0x18f   :  { %v321_v56 = vadd.f32 %v320_v55, %v192_v52 }
 0x190   :  { %1105 = vtanh.f32 %v326_v54 }
 0x191   :  { %1107 = vtanh.f32 %v321_v56  ;;  %v964_v58 = vpop.f32.mrb[6].mxu0  ;;  %v866_v56 = vld [vmem:[%s1466_s2 + $0x88] sm:$0xff] }
 0x192   :  { %v1098_v59 = vpop.eup %1097  ;;  %v336_v61 = vadd.f32 %v964_v58, %v207_v57  ;;  %v330_v62 = vpop.f32.mrb[7].mxu0  ;;  %v870_v57 = vld [vmem:[%s1466_s2 + $0xa8] sm:$0xff]  ;;  %v867_v58 = vld [vmem:[%s1466_s2 + $0x90] sm:$0xff] }
 0x193   :  { %v1100_v63 = vpop.eup %1099  ;;  %v331_v0 = vadd.f32 %v330_v62, %v202_v60  ;;  %v868_v60 = vld [vmem:[%s1466_s2 + $0x98] sm:$0xff]  ;;  %v568_v62 = vpop.permute.xlu1 %567 }
 0x194   :  { %1109 = vtanh.f32 %v336_v61  ;;  %v1037_v1 = vpack.c.bf16 %v1098_v59, %v1100_v63  ;;  %v871_v59 = vld [vmem:[%s1466_s2 + $0xb0] sm:$0xff]  ;;  %v872_v61 = vld [vmem:[%s1466_s2 + $0xb8] sm:$0xff]  ;;  %v563_v63 = vpop.permute.xlu0 %562 }
 0x195   :  { %1111 = vtanh.f32 %v331_v0 }
 0x196   :  { %v1102_v2 = vpop.eup %1101  ;;  %1038 = vmatprep.subr.bf16.mxu1 %v1037_v1 }
 0x197   :  { %v1104_v3 = vpop.eup %1103  ;;  %1040 = vmatpush3.bf16.msra.mxu1 %v1037_v1  ;;  %v578_v0 = vpop.permute.xlu1 %577 }
 0x198   :  { %v1041_v4 = vpack.c.bf16 %v1102_v2, %v1104_v3  ;;  %v573_v1 = vpop.permute.xlu0 %572 }
 0x19a   :  { %v1106_v5 = vpop.eup %1105  ;;  %1042 = vmatprep.subr.bf16.mxu1 %v1041_v4 }
 0x19b   :  { %v1108_v6 = vpop.eup %1107  ;;  %1044 = vmatpush3.bf16.msra.mxu1 %v1041_v4  ;;  %v588_v2 = vpop.permute.xlu1 %587 }
 0x19c   :  { %v1045_v7 = vpack.c.bf16 %v1106_v5, %v1108_v6  ;;  %v583_v3 = vpop.permute.xlu0 %582 }
 0x19e   :  { %v1110_v8 = vpop.eup %1109  ;;  %1046 = vmatprep.subr.bf16.mxu1 %v1045_v7 }
 0x19f   :  { %v1112_v9 = vpop.eup %1111  ;;  %1048 = vmatpush3.bf16.msra.mxu1 %v1045_v7 }
 0x1a0   :  { %v1049_v10 = vpack.c.bf16 %v1110_v8, %v1112_v9 }
 0x1a2   :  { %1050 = vmatprep.subr.bf16.mxu1 %v1049_v10 }
 0x1a3   :  { %1052 = vmatpush3.bf16.msra.mxu1 %v1049_v10  ;;  %v598_v10 = vpop.permute.xlu1 %597 }
 0x1a6   :  { %982 = vmatmul.mubr.msk.f32.vlgmr.msra.gmra.mrb[0].mxu1 %vm209_vm0, %v842_v11  ;;  %v593_v11 = vpop.permute.xlu0 %592 }
 0x1a7   :  { %984 = vmatprep.mubr.msk.f32.mxu1 %vm209_vm0, %v843_v12 }
 0x1aa   :  { %985 = vmatmul.mubr.msk.f32.gmra.mrb[2].mxu1 %vm209_vm0, %v844_v13 }
 0x1ab   :  { %987 = vmatprep.mubr.msk.f32.mxu1 %vm209_vm0, %v845_v14 }
 0x1ae   :  { %988 = vmatmul.mubr.msk.f32.gmra.mrb[4].mxu1 %vm209_vm0, %v846_v15 }
 0x1af   :  { %990 = vmatprep.mubr.msk.f32.mxu1 %vm209_vm0, %v847_v16 }
 0x1b2   :  { %991 = vmatmul.mubr.msk.f32.gmra.mrb[6].mxu1 %vm209_vm0, %v848_v17 }
 0x1b3   :  { %1015 = vmatprep.mubr.msk.f32.mxu1 %vm209_vm0, %v869_v19  ;;  %v748_v19 = vpop.permute.xlu0 %747 }
 0x279   :  { %v983_v23 = vpop.f32.mrb[0].mxu1 }
 0x27a   :  { %v501_v25 = vadd.f32 %v983_v23, %v373_v20  ;;  %v495_v26 = vpop.f32.mrb[1].mxu1 }
 0x27b   :  { %v496_v27 = vadd.f32 %v495_v26, %v368_v21  ;;  %v753_v21 = vpop.permute.xlu1 %752 }
 0x27c   :  { %1113 = vtanh.f32 %v501_v25 }
 0x27d   :  { %1115 = vtanh.f32 %v496_v27  ;;  %v986_v28 = vpop.f32.mrb[2].mxu1  ;;  %v758_v27 = vpop.permute.xlu0 %757 }
 0x27e   :  { %v511_v29 = vadd.f32 %v986_v28, %v383_v22  ;;  %v505_v30 = vpop.f32.mrb[3].mxu1 }
 0x27f   :  { %v506_v32 = vadd.f32 %v505_v30, %v378_v24 }
 0x280   :  { %1117 = vtanh.f32 %v511_v29  ;;  %v763_v29 = vpop.permute.xlu1 %762 }
 0x281   :  { %1119 = vtanh.f32 %v506_v32  ;;  %v989_v34 = vpop.f32.mrb[4].mxu1 }
 0x282   :  { %v521_v35 = vadd.f32 %v989_v34, %v393_v31  ;;  %v515_v36 = vpop.f32.mrb[5].mxu1 }
 0x283   :  { %v516_v37 = vadd.f32 %v515_v36, %v388_v33 }
 0x284   :  { %1121 = vtanh.f32 %v521_v35  ;;  %v768_v35 = vpop.permute.xlu0 %767 }
 0x285   :  { %1123 = vtanh.f32 %v516_v37  ;;  %v992_v39 = vpop.f32.mrb[6].mxu1 }
 0x286   :  { %v1114_v40 = vpop.eup %1113  ;;  %v531_v42 = vadd.f32 %v992_v39, %v403_v38  ;;  %v525_v43 = vpop.f32.mrb[7].mxu1 }
 0x287   :  { %v1116_v44 = vpop.eup %1115  ;;  %v526_v45 = vadd.f32 %v525_v43, %v398_v41  ;;  %v773_v39 = vpop.permute.xlu1 %772 }
 0x288   :  { %1125 = vtanh.f32 %v531_v42  ;;  %v1053_v46 = vpack.c.bf16 %v1114_v40, %v1116_v44 }
 0x289   :  { %1127 = vtanh.f32 %v526_v45 }
 0x28a   :  { %v1118_v47 = vpop.eup %1117  ;;  %1054 = vmatprep.subr.bf16.mxu0 %v1053_v46  ;;  %1069 = vmatprep.subr.bf16.mxu1 %v1053_v46 }
 0x28b   :  { %v1120_v48 = vpop.eup %1119  ;;  %1056 = vmatpush3.bf16.msra.mxu0 %v1053_v46  ;;  %1073 = vmatpush3.bf16.msra.mxu1 %v1053_v46  ;;  %v778_v46 = vpop.permute.xlu0 %777 }
 0x28c   :  { %v1057_v49 = vpack.c.bf16 %v1118_v47, %v1120_v48 }
 0x28e   :  { %v1122_v50 = vpop.eup %1121  ;;  %1058 = vmatprep.subr.bf16.mxu0 %v1057_v49  ;;  %1070 = vmatprep.subr.bf16.mxu1 %v1057_v49 }
 0x28f   :  { %v1124_v51 = vpop.eup %1123  ;;  %1060 = vmatpush3.bf16.msra.mxu0 %v1057_v49  ;;  %1074 = vmatpush3.bf16.msra.mxu1 %v1057_v49  ;;  %v783_v49 = vpop.permute.xlu1 %782 }
 0x290   :  { %v1061_v52 = vpack.c.bf16 %v1122_v50, %v1124_v51 }
 0x292   :  { %v1126_v53 = vpop.eup %1125  ;;  %1062 = vmatprep.subr.bf16.mxu0 %v1061_v52  ;;  %1071 = vmatprep.subr.bf16.mxu1 %v1061_v52 }
 0x293   :  { %v1128_v54 = vpop.eup %1127  ;;  %1064 = vmatpush3.bf16.msra.mxu0 %v1061_v52  ;;  %1075 = vmatpush3.bf16.msra.mxu1 %v1061_v52 }
 0x294   :  { %v1065_v55 = vpack.c.bf16 %v1126_v53, %v1128_v54 }
 0x296   :  { %1066 = vmatprep.subr.bf16.mxu0 %v1065_v55  ;;  %1072 = vmatprep.subr.bf16.mxu1 %v1065_v55 }
 0x297   :  { %1068 = vmatpush3.bf16.msra.mxu0 %v1065_v55  ;;  %1076 = vmatpush3.bf16.msra.mxu1 %v1065_v55 }
 0x29a   :  { %1010 = vmatmul.mubr.msk.f32.vlgmr.msra.gmra.mrb[8].mxu0 %vm209_vm0, %v866_v56  ;;  %1016 = vmatmul.mubr.msk.f32.vlgmr.msra.gmra.mrb[8].mxu1 %vm209_vm0, %v870_v57 }
 0x29b   :  { %1012 = vmatprep.mubr.msk.f32.mxu0 %vm209_vm0, %v867_v58  ;;  %1018 = vmatprep.mubr.msk.f32.mxu1 %vm209_vm0, %v871_v59  ;;  %v807_v58 = vstv %s1469_s5 }
 0x29e   :  { %1013 = vmatmul.mubr.msk.f32.gmra.mrb[10].mxu0 %vm209_vm0, %v868_v60  ;;  %1019 = vmatmul.mubr.msk.f32.gmra.mrb[10].mxu1 %vm209_vm0, %v872_v61 }
 0x36d   :  { %v1011_v4 = vpop.f32.mrb[8].mxu0  ;;  %v1017_v5 = vpop.f32.mrb[8].mxu1 }
 0x36e   :  { %v696_v6 = vadd.f32 %v1011_v4, %v568_v62  ;;  %v690_v7 = vpop.f32.mrb[9].mxu0  ;;  %v710_v8 = vpop.f32.mrb[9].mxu1  ;;  %v716_v20 = vadd.f32 %v1017_v5, %v588_v2 }
 0x36f   :  { %v691_v9 = vadd.f32 %v690_v7, %v563_v63  ;;  %v711_v18 = vadd.f32 %v710_v8, %v583_v3 }
 0x370   :  { %1129 = vtanh.f32 %v696_v6 }
 0x371   :  { %v1014_v12 = vpop.f32.mrb[10].mxu0  ;;  %v1020_v13 = vpop.f32.mrb[10].mxu1  ;;  %1131 = vtanh.f32 %v691_v9 }
 0x372   :  { %v706_v14 = vadd.f32 %v1014_v12, %v578_v0  ;;  %v700_v15 = vpop.f32.mrb[11].mxu0  ;;  %v720_v16 = vpop.f32.mrb[11].mxu1  ;;  %v726_v24 = vadd.f32 %v1020_v13, %v598_v10 }
 0x373   :  { %v701_v17 = vadd.f32 %v700_v15, %v573_v1  ;;  %v721_v22 = vadd.f32 %v720_v16, %v593_v11 }
 0x374   :  { %1133 = vtanh.f32 %v706_v14 }
 0x375   :  { %1135 = vtanh.f32 %v701_v17 }
 0x376   :  { %1137 = vtanh.f32 %v711_v18 }
 0x377   :  { %1139 = vtanh.f32 %v716_v20 }
 0x378   :  { %1141 = vtanh.f32 %v721_v22 }
 0x379   :  { %1143 = vtanh.f32 %v726_v24 }
 0x37a   :  { %v1130_v23 = vpop.eup %1129 }
 0x37b   :  { %v786_v25 = vmul.f32 %v1130_v23, %v753_v21  ;;  %v1132_v26 = vpop.eup %1131 }
 0x37c   :  { %v785_v28 = vmul.f32 %v1132_v26, %v748_v19 }
 0x37e   :  { %v1134_v30 = vpop.eup %1133  ;;  %v793_v31 = vadd.f32 %v786_v25, %v785_v28 }
 0x37f   :  { %v1136_v32 = vpop.eup %1135  ;;  %v788_v36 = vmul.f32 %v1134_v30, %v763_v29 }
 0x380   :  { %v787_v33 = vmul.f32 %v1136_v32, %v758_v27  ;;  %v1138_v34 = vpop.eup %1137 }
 0x381   :  { %v1140_v38 = vpop.eup %1139  ;;  %v789_v40 = vmul.f32 %v1138_v34, %v768_v35 }
 0x382   :  { %v794_v37 = vadd.f32 %v793_v31, %v787_v33  ;;  %v1142_v42 = vpop.eup %1141  ;;  %v790_v43 = vmul.f32 %v1140_v38, %v773_v39 }
 0x383   :  { %v1144_v45 = vpop.eup %1143  ;;  %v791_v47 = vmul.f32 %v1142_v42, %v778_v46 }
 0x384   :  { %v795_v41 = vadd.f32 %v794_v37, %v788_v36  ;;  %v792_v50 = vmul.f32 %v1144_v45, %v783_v49 }
 0x386   :  { %v796_v44 = vadd.f32 %v795_v41, %v789_v40 }
 0x388   :  { %v797_v48 = vadd.f32 %v796_v44, %v790_v43 }
 0x38a   :  { %v798_v51 = vadd.f32 %v797_v48, %v791_v47 }
 0x38c   :  { %v799_v52 = vadd.f32 %v798_v51, %v792_v50 }
 0x38e   :  { %v800_v53 = vrot.slane %v799_v52, 4 }
 0x390   :  { %v801_v54 = vadd.f32 %v800_v53, %v799_v52 }
 0x392   :  { %v802_v55 = vrot.slane %v801_v54, 2 }
 0x394   :  { %v803_v56 = vadd.f32 %v802_v55, %v801_v54 }
 0x396   :  { %v804_v57 = vrot.slane %v803_v56, 1 }
 0x398   :  { %v805_v59 = vadd.f32 %v804_v57, %v803_v56 }
 0x39a   :  { %v808_v60 = vadd.f32 %v807_v58, %v805_v59 }
 0x39c   :  { %809 = vst [vmem:[#allocation3] sm:$0x1] %v808_v60 }
 0x39d   :  { %1156 = shalt.err (!%p1153_p4)
}
 0x39e   :  { %s1157_s18 = scalar_lea.hbm %s1470_s6, 16 }
 0x39f   :  { %p1158_p5 = scmp.ne.s32.totalorder %s1470_s6, %s1157_s18  ;;  %p1161_p6 = scmp.lt.u32.totalorder %s1157_s18, %s1470_s6 }
 0x3a1   :  { %p1163_p7 = pnand %p1161_p6, %p1158_p5 }
 0x3a3   :  { %1166 = shalt.err (!%p1163_p7)
}
 0x3a4   :  { %819 = dma.vmem_to_hbm [thread:$0]  %s817_s13, 16, %s1470_s6, [#allocation4]  }
 0x3a5   :  { %1167 = dma.done.wait [#allocation4], 16  }
 0x3a6   :  { %1168 = vsyncadd [#allocation4], 4294967280 }
 0x3a7   :  { %823 = vsyncpa [#allocation4], 1 }

</bundles_post_ra>
